<compile_context>
chip_gen: v7x
topology: tpu7x:2x2x1
jax: 0.10.0
libtpu: 0.0.40
codegen_flags: <defaults>
</compile_context>

<pallas_src>
import functools

import jax
import jax.numpy as jnp
from jax.experimental import pallas as pl
from jax.experimental.pallas import tpu as pltpu


def _round_up(x: int, m: int) -> int:
    return (x + m - 1) // m * m


def _supcon_tile_kernel(feat_tile_ref, feat_all_ref, lab_col_ref, lab_row_ref,
                        out_ref, *, inv_t: float, n_valid: int):
    tm = feat_tile_ref.shape[0]
    n_pad = feat_all_ref.shape[0]
    tile = pl.program_id(0)

    # --- cosine-normalize features (norm clamped at 1e-8, as in the reference) ---
    ft = feat_tile_ref[...].astype(jnp.float32)                        # [TM, D]
    fa = feat_all_ref[...].astype(jnp.float32)                         # [Np, D]
    ft = ft * jax.lax.rsqrt(jnp.maximum(jnp.sum(ft * ft, axis=1, keepdims=True), 1e-16))
    fa = fa * jax.lax.rsqrt(jnp.maximum(jnp.sum(fa * fa, axis=1, keepdims=True), 1e-16))

    # sim[i, j] = <ft_i, fa_j>; contract the feature axis of both (no transpose).
    sim = jax.lax.dot_general(
        ft, fa, dimension_numbers=(((1,), (1,)), ((), ())),
        preferred_element_type=jnp.float32)                            # [TM, Np]

    same = lab_col_ref[...] == lab_row_ref[...]                        # [TM, Np] bool

    row_idx = tile * tm + jax.lax.broadcasted_iota(jnp.int32, (tm, n_pad), 0)
    col_idx = jax.lax.broadcasted_iota(jnp.int32, (tm, n_pad), 1)
    col_valid = col_idx < n_valid
    pos_mask = same & (row_idx != col_idx) & col_valid & (row_idx < n_valid)

    s_over_t = sim * inv_t
    e = jnp.exp(s_over_t)                                              # [TM, Np]

    # Negatives: different label & valid column (the diagonal is excluded
    # automatically because every row shares its own label).
    neg_sum = jnp.sum(jnp.where((~same) & col_valid, e, 0.0),
                      axis=1, keepdims=True)                           # [TM, 1]

    # -log(exp(s/T) / (exp(s/T) + neg_sum)) = log(exp(s/T) + neg_sum) - s/T,
    # applied on positive (same-label, off-diagonal) entries only.  The log
    # argument is strictly positive everywhere (e > 0, neg_sum >= 0), so no
    # select is needed before the log; the mask multiply zeroes non-positives.
    pos_f = pos_mask.astype(jnp.float32)
    row_sum = jnp.sum(pos_f * (jnp.log(e + neg_sum) - s_over_t),
                      axis=1, keepdims=True)                           # [TM, 1]

    cnt = jnp.sum(pos_f, axis=1, keepdims=True)                        # [TM, 1]
    denom = jnp.maximum(cnt, 1.0)                                      # 0 -> 1 clamp
    out_ref[...] = row_sum / denom                                     # per-row loss


def supcon_loss(feature_1, feature_2, fusion_feature, labels, temperature=0.07):
    """Pallas implementation of SupConLoss.forward.

    feature_1 / feature_2 are unused (matching the PyTorch reference forward).
    """
    del feature_1, feature_2
    n, d = fusion_feature.shape

    # Row tile: 256 rows per grid step for large n, otherwise the whole batch
    # rounded up to the 8-sublane granularity (single tile).
    tm = 256 if n >= 256 else _round_up(n, 8)
    n_pad = _round_up(n, tm)
    d_pad = _round_up(d, 128)          # lane-dense feature loads; zero-padding
    num_tiles = n_pad // tm            # is invariant for cosine similarity.

    feat = jnp.pad(fusion_feature, ((0, n_pad - n), (0, d_pad - d)))
    lab = jnp.pad(labels.astype(jnp.int32), (0, n_pad - n), constant_values=-1)
    lab_col = lab.reshape(n_pad, 1)
    lab_row = lab.reshape(1, n_pad)

    kernel = functools.partial(_supcon_tile_kernel,
                               inv_t=1.0 / float(temperature), n_valid=n)

    per_row = pl.pallas_call(
        kernel,
        grid=(num_tiles,),
        in_specs=[
            pl.BlockSpec((tm, d_pad), lambda i: (i, 0)),     # this tile's rows
            pl.BlockSpec((n_pad, d_pad), lambda i: (0, 0)),  # all rows (VMEM-resident)
            pl.BlockSpec((tm, 1), lambda i: (i, 0)),         # tile labels (column)
            pl.BlockSpec((1, n_pad), lambda i: (0, 0)),      # all labels (row)
        ],
        out_specs=pl.BlockSpec((tm, 1), lambda i: (i, 0)),
        out_shape=jax.ShapeDtypeStruct((n_pad, 1), jnp.float32),
        compiler_params=pltpu.CompilerParams(
            dimension_semantics=("parallel",),
            vmem_limit_bytes=64 * 1024 * 1024),
    )(feat, feat, lab_col, lab_row)

    # Padded rows contribute exactly 0; the tiny final reduction over n scalars
    # stays in the wrapper so the row-tile grid axis remains truly "parallel".
    return jnp.sum(per_row) / n


def _reference_loss(fusion_feature, labels, temperature=0.07):
    """Pure-JAX reference mirroring the PyTorch code, for a sanity check."""
    f = fusion_feature.astype(jnp.float32)
    n = labels.shape[0]
    norms = jnp.maximum(jnp.linalg.norm(f, axis=1, keepdims=True), 1e-8)
    fn = f / norms
    sim = fn @ fn.T
    mask = (labels[:, None] == labels[None, :]).astype(jnp.float32)
    mask_no_sim = 1.0 - mask
    diag0 = 1.0 - jnp.eye(n, dtype=jnp.float32)
    sm = jnp.exp(sim / temperature) * diag0
    pos = mask * sm
    neg = sm - pos
    neg_sum = jnp.sum(neg, axis=1, keepdims=True)
    frac = pos / (pos + neg_sum)
    loss_mat = -jnp.log(mask_no_sim + frac + jnp.eye(n, dtype=jnp.float32))
    mask_loss = jnp.sum(mask * diag0, axis=1)
    mask_2 = (mask_loss > 0).astype(jnp.float32)
    mask_loss = 1.0 - mask_2 + mask_loss
    return jnp.sum(jnp.sum(loss_mat, axis=1) / mask_loss) / n


if __name__ == "__main__":
    key = jax.random.PRNGKey(0)
    k1, k2, k3, k4 = jax.random.split(key, 4)

    n, d = 8, 32
    feature_1 = jax.random.normal(k1, (n, d), dtype=jnp.float32)
    feature_2 = jax.random.normal(k2, (n, d), dtype=jnp.float32)
    fusion_feature = jax.random.normal(k3, (n, d), dtype=jnp.float32)
    labels = jax.random.randint(k4, (n,), 0, 3, dtype=jnp.int32)

    out = supcon_loss(feature_1, feature_2, fusion_feature, labels, temperature=0.07)
    out = jax.block_until_ready(out)

    ref = _reference_loss(fusion_feature, labels, temperature=0.07)
    assert jnp.allclose(out, ref, rtol=1e-4, atol=1e-4), (out, ref)

    print("KERNEL_OK")
</pallas_src>

<mosaic_0001>
module attributes {stable_mosaic.version = 11 : i64} {
  func.func @_supcon_tile_kernel(%arg0: i32, %arg1: memref<8x128xf32, #tpu.memory_space<vmem>>, %arg2: memref<8x128xf32, #tpu.memory_space<vmem>>, %arg3: memref<8x1xi32, #tpu.memory_space<vmem>>, %arg4: memref<1x8xi32, #tpu.memory_space<vmem>>, %arg5: memref<8x1xf32, #tpu.memory_space<vmem>>) attributes {dimension_semantics = [#tpu.dimension_semantics<parallel>], iteration_bounds = array<i64: 1>, scalar_prefetch = 0 : i64, scratch_operands = 0 : i64, tpu.core_type = #tpu.core_type<tc>, window_params = [{transform_indices = @transform_0, window_bounds = array<i64: 8, 128>}, {pipeline_mode = #tpu.pipeline_mode<synchronous>, transform_indices = @transform_1, window_bounds = array<i64: 8, 128>}, {transform_indices = @transform_2, window_bounds = array<i64: 8, 1>}, {pipeline_mode = #tpu.pipeline_mode<synchronous>, transform_indices = @transform_3, window_bounds = array<i64: 1, 8>}, {transform_indices = @transform_4, window_bounds = array<i64: 8, 1>}]} {
    %c0 = arith.constant 0 : index
    %c0_0 = arith.constant 0 : index
    %0 = vector.load %arg1[%c0, %c0_0] : memref<8x128xf32, #tpu.memory_space<vmem>>, vector<8x128xf32>
    %c0_1 = arith.constant 0 : index
    %c0_2 = arith.constant 0 : index
    %1 = vector.load %arg2[%c0_1, %c0_2] : memref<8x128xf32, #tpu.memory_space<vmem>>, vector<8x128xf32>
    %2 = arith.mulf %0, %0 : vector<8x128xf32>
    %cst = arith.constant dense<0.000000e+00> : vector<8xf32>
    %3 = vector.multi_reduction <add>, %2, %cst [1] : vector<8x128xf32> to vector<8xf32>
    %4 = vector.shape_cast %3 : vector<8xf32> to vector<8x1xf32>
    %cst_3 = arith.constant 1.000000e-16 : f32
    %5 = vector.broadcast %cst_3 : f32 to vector<8x1xf32>
    %6 = arith.maximumf %4, %5 : vector<8x1xf32>
    %7 = math.rsqrt %6 : vector<8x1xf32>
    %8 = vector.broadcast %7 : vector<8x1xf32> to vector<8x128xf32>
    %9 = arith.mulf %0, %8 : vector<8x128xf32>
    %10 = arith.mulf %1, %1 : vector<8x128xf32>
    %cst_4 = arith.constant dense<0.000000e+00> : vector<8xf32>
    %11 = vector.multi_reduction <add>, %10, %cst_4 [1] : vector<8x128xf32> to vector<8xf32>
    %12 = vector.shape_cast %11 : vector<8xf32> to vector<8x1xf32>
    %cst_5 = arith.constant 1.000000e-16 : f32
    %13 = vector.broadcast %cst_5 : f32 to vector<8x1xf32>
    %14 = arith.maximumf %12, %13 : vector<8x1xf32>
    %15 = math.rsqrt %14 : vector<8x1xf32>
    %16 = vector.broadcast %15 : vector<8x1xf32> to vector<8x128xf32>
    %17 = arith.mulf %1, %16 : vector<8x128xf32>
    %cst_6 = arith.constant dense<0.000000e+00> : vector<8x8xf32>
    %18 = tpu.matmul %9, %17, %cst_6 {dimension_numbers = #tpu.dot_dimension_numbers<[1], [1], [0], [0], [0, 0, 1, 0], [], []>} : vector<8x128xf32>, vector<8x128xf32>, vector<8x8xf32> -> vector<8x8xf32>
    %c0_7 = arith.constant 0 : index
    %c0_8 = arith.constant 0 : index
    %19 = vector.load %arg3[%c0_7, %c0_8] : memref<8x1xi32, #tpu.memory_space<vmem>>, vector<8x1xi32>
    %c0_9 = arith.constant 0 : index
    %c0_10 = arith.constant 0 : index
    %20 = vector.load %arg4[%c0_9, %c0_10] : memref<1x8xi32, #tpu.memory_space<vmem>>, vector<1x8xi32>
    %21 = vector.broadcast %19 : vector<8x1xi32> to vector<8x8xi32>
    %22 = vector.broadcast %20 : vector<1x8xi32> to vector<8x8xi32>
    %23 = arith.cmpi eq, %21, %22 : vector<8x8xi32>
    %c8_i32 = arith.constant 8 : i32
    %24 = arith.muli %arg0, %c8_i32 : i32
    %25 = tpu.iota {dimensions = array<i32: 0>} : vector<8x8xi32>
    %26 = vector.broadcast %24 : i32 to vector<8x8xi32>
    %27 = arith.addi %26, %25 : vector<8x8xi32>
    %28 = tpu.iota {dimensions = array<i32: 1>} : vector<8x8xi32>
    %c8_i32_11 = arith.constant 8 : i32
    %29 = vector.broadcast %c8_i32_11 : i32 to vector<8x8xi32>
    %30 = arith.cmpi slt, %28, %29 : vector<8x8xi32>
    %31 = arith.cmpi ne, %27, %28 : vector<8x8xi32>
    %32 = arith.andi %23, %31 : vector<8x8xi1>
    %33 = arith.andi %32, %30 : vector<8x8xi1>
    %c8_i32_12 = arith.constant 8 : i32
    %34 = vector.broadcast %c8_i32_12 : i32 to vector<8x8xi32>
    %35 = arith.cmpi slt, %27, %34 : vector<8x8xi32>
    %36 = arith.andi %33, %35 : vector<8x8xi1>
    %cst_13 = arith.constant 14.2857141 : f32
    %37 = vector.broadcast %cst_13 : f32 to vector<8x8xf32>
    %38 = arith.mulf %18, %37 : vector<8x8xf32>
    %39 = math.exp %38 : vector<8x8xf32>
    %cst_14 = arith.constant dense<true> : vector<8x8xi1>
    %40 = arith.xori %23, %cst_14 : vector<8x8xi1>
    %41 = arith.andi %40, %30 : vector<8x8xi1>
    %cst_15 = arith.constant 0.000000e+00 : f32
    %42 = vector.broadcast %cst_15 : f32 to vector<8x8xf32>
    %43 = arith.select %41, %39, %42 : vector<8x8xi1>, vector<8x8xf32>
    %cst_16 = arith.constant dense<0.000000e+00> : vector<8xf32>
    %44 = vector.multi_reduction <add>, %43, %cst_16 [1] : vector<8x8xf32> to vector<8xf32>
    %45 = vector.shape_cast %44 : vector<8xf32> to vector<8x1xf32>
    %46 = arith.extui %36 : vector<8x8xi1> to vector<8x8xi32>
    %47 = arith.sitofp %46 : vector<8x8xi32> to vector<8x8xf32>
    %48 = vector.broadcast %45 : vector<8x1xf32> to vector<8x8xf32>
    %49 = arith.addf %39, %48 : vector<8x8xf32>
    %50 = math.log %49 : vector<8x8xf32>
    %51 = arith.subf %50, %38 : vector<8x8xf32>
    %52 = arith.mulf %47, %51 : vector<8x8xf32>
    %cst_17 = arith.constant dense<0.000000e+00> : vector<8xf32>
    %53 = vector.multi_reduction <add>, %52, %cst_17 [1] : vector<8x8xf32> to vector<8xf32>
    %54 = vector.shape_cast %53 : vector<8xf32> to vector<8x1xf32>
    %cst_18 = arith.constant dense<0.000000e+00> : vector<8xf32>
    %55 = vector.multi_reduction <add>, %47, %cst_18 [1] : vector<8x8xf32> to vector<8xf32>
    %56 = vector.shape_cast %55 : vector<8xf32> to vector<8x1xf32>
    %cst_19 = arith.constant 1.000000e+00 : f32
    %57 = vector.broadcast %cst_19 : f32 to vector<8x1xf32>
    %58 = arith.maximumf %56, %57 : vector<8x1xf32>
    %59 = arith.divf %54, %58 : vector<8x1xf32>
    %c0_20 = arith.constant 0 : index
    %c0_21 = arith.constant 0 : index
    %60 = vector.load %arg5[%c0_20, %c0_21] : memref<8x1xf32, #tpu.memory_space<vmem>>, vector<8x1xf32>
    tpu.vector_store %arg5[%c0_20, %c0_21], %59 {strides = array<i32>} : memref<8x1xf32, #tpu.memory_space<vmem>>, vector<8x1xf32>,
    return
  }
  func.func @transform_0(%arg0: i32) -> (i32, i32) {
    %c0_i32 = arith.constant 0 : i32
    %c0_i32_0 = arith.constant 0 : i32
    return %arg0, %c0_i32 : i32, i32
  }
  func.func @transform_1(%arg0: i32) -> (i32, i32) {
    %c0_i32 = arith.constant 0 : i32
    %c0_i32_0 = arith.constant 0 : i32
    %c0_i32_1 = arith.constant 0 : i32
    return %c0_i32, %c0_i32_0 : i32, i32
  }
  func.func @transform_2(%arg0: i32) -> (i32, i32) {
    %c0_i32 = arith.constant 0 : i32
    %c0_i32_0 = arith.constant 0 : i32
    return %arg0, %c0_i32 : i32, i32
  }
  func.func @transform_3(%arg0: i32) -> (i32, i32) {
    %c0_i32 = arith.constant 0 : i32
    %c0_i32_0 = arith.constant 0 : i32
    %c0_i32_1 = arith.constant 0 : i32
    return %c0_i32, %c0_i32_0 : i32, i32
  }
  func.func @transform_4(%arg0: i32) -> (i32, i32) {
    %c0_i32 = arith.constant 0 : i32
    %c0_i32_0 = arith.constant 0 : i32
    return %arg0, %c0_i32 : i32, i32
  }
}

</mosaic_0001>

<bundles_post_ra>
// kernel: tpu_custom_call.1
= control target key start
LH: loop header
LB: loop body
LE: loop exit
PB: predicated region body
PF: predicated region fallthrough
CT: control target
= control target key end

     0   :  { %9 = vsyncpa [#allocation3], 0  ;;  %s462_s0 = inlined_call_operand.hbm [shape: f32[8,128], index: 0, kind: input, shape index: {}]   ;;  %s463_s1 = inlined_call_operand.hbm [shape: f32[8,128], index: 1, kind: input, shape index: {}]   ;;  %s464_s2 = inlined_call_operand.hbm [shape: s32[8,1], index: 2, kind: input, shape index: {}]   ;;  %s465_s3 = inlined_call_operand.hbm [shape: s32[1,8], index: 3, kind: input, shape index: {}]   ;;  %s466_s4 = inlined_call_operand.hbm [shape: f32[8,1], index: 4, kind: output, shape index: {}]  }
   0x1   :  { %10 = vsyncpa [#allocation6], 0 }
   0x2   :  { %11 = vsyncpa [#allocation9], 0 }
   0x3   :  { %12 = vsyncpa [#allocation4], 0  ;;  %s365_s15 = smov [#allocation5]   ;;  %s366_s17 = smov [#allocation2]  }
   0x4   :  { %s29_s16 = sshll.u32 %s365_s15, 4  ;;  %s19_s18 = sshll.u32 %s366_s17, 4  ;;  %s30_s16 = int_to_ptr.vmem [resolvable:$true] %s29_s16  ;;  %s20_s18 = int_to_ptr.vmem [resolvable:$true] %s19_s18 }
   0x5   :  { %s247_s21 = scalar_lea.hbm %s463_s1, 128 }
   0x6   :  { %p248_p0 = scmp.ne.s32.totalorder %s463_s1, %s247_s21  ;;  %p251_p1 = scmp.lt.u32.totalorder %s247_s21, %s463_s1 }
   0x8   :  { %p253_p2 = pnand %p251_p1, %p248_p0 }
   0xa   :  { %256 = shalt.err (!%p253_p2)
}
   0xb   :  { %s257_s26 = scalar_lea.vmem %s30_s16, 128  ;;  %p262_p4 = scmp.lt.s32.totalorder %s30_s16, %s30_s16 }
   0xc   :  { %p258_p3 = scmp.ne.s32.totalorder %s30_s16, %s257_s26  ;;  %p263_p5 = scmp.lt.s32.totalorder %s257_s26, %s257_s26 }
   0xe   :  { %p264_p6 = por %p263_p5, %p262_p4 }
  0x10   :  { %p265_p7 = pnand %p264_p6, %p258_p3 }
  0x12   :  { %268 = shalt.err (!%p265_p7)
}
  0x13   :  { %32 = dma.hbm_to_vmem [thread:$0]  %s463_s1, 128, %s30_s16, [#allocation6]  }
  0x14   :  { %s269_s5 = scalar_lea.hbm %s462_s0, 128 }
  0x15   :  { %p270_p8 = scmp.ne.s32.totalorder %s462_s0, %s269_s5  ;;  %p273_p9 = scmp.lt.u32.totalorder %s269_s5, %s462_s0 }
  0x17   :  { %p275_p10 = pnand %p273_p9, %p270_p8 }
  0x19   :  { %278 = shalt.err (!%p275_p10)
}
  0x1a   :  { %s279_s10 = scalar_lea.vmem %s20_s18, 128  ;;  %p284_p12 = scmp.lt.s32.totalorder %s20_s18, %s20_s18 }
  0x1b   :  { %p280_p11 = scmp.ne.s32.totalorder %s20_s18, %s279_s10  ;;  %p285_p13 = scmp.lt.s32.totalorder %s279_s10, %s279_s10 }
  0x1d   :  { %p286_p0 = por %p285_p13, %p284_p12 }
  0x1f   :  { %p287_p1 = pnand %p286_p0, %p280_p11 }
  0x21   :  { %290 = shalt.err (!%p287_p1)
}
  0x22   :  { %22 = dma.hbm_to_vmem [thread:$0]  %s462_s0, 128, %s20_s18, [#allocation3]  }
  0x23   :  { %s367_s12 = smov [#allocation7]   ;;  %s368_s14 = smov [#allocation8]  }
  0x24   :  { %s39_s13 = sshll.u32 %s367_s12, 4  ;;  %s49_s15 = sshll.u32 %s368_s14, 4  ;;  %s40_s13 = int_to_ptr.vmem [resolvable:$true] %s39_s13  ;;  %s50_s15 = int_to_ptr.vmem [resolvable:$true] %s49_s15 }
  0x25   :  { %s291_s19 = scalar_lea.hbm %s464_s2, 128 }
  0x26   :  { %p292_p2 = scmp.ne.s32.totalorder %s464_s2, %s291_s19  ;;  %p295_p3 = scmp.lt.u32.totalorder %s291_s19, %s464_s2 }
  0x28   :  { %p297_p4 = pnand %p295_p3, %p292_p2 }
  0x2a   :  { %300 = shalt.err (!%p297_p4)
}
  0x2b   :  { %s301_s0 = scalar_lea.vmem %s40_s13, 128  ;;  %p306_p6 = scmp.lt.s32.totalorder %s40_s13, %s40_s13 }
  0x2c   :  { %p302_p5 = scmp.ne.s32.totalorder %s40_s13, %s301_s0  ;;  %p307_p7 = scmp.lt.s32.totalorder %s301_s0, %s301_s0 }
  0x2e   :  { %p308_p8 = por %p307_p7, %p306_p6 }
  0x30   :  { %p309_p9 = pnand %p308_p8, %p302_p5 }
  0x32   :  { %312 = shalt.err (!%p309_p9)
}
  0x33   :  { %42 = dma.hbm_to_vmem [thread:$0]  %s464_s2, 128, %s40_s13, [#allocation6]  }
  0x34   :  { %s313_s27 = scalar_lea.hbm %s465_s3, 16 }
  0x35   :  { %p314_p10 = scmp.ne.s32.totalorder %s465_s3, %s313_s27  ;;  %p317_p11 = scmp.lt.u32.totalorder %s313_s27, %s465_s3 }
  0x37   :  { %p319_p12 = pnand %p317_p11, %p314_p10 }
  0x39   :  { %322 = shalt.err (!%p319_p12)
}
  0x3a   :  { %s323_s6 = scalar_lea.vmem %s50_s15, 16  ;;  %s327_s7 = scalar_lea.vmem %s50_s15, 32 }
  0x3b   :  { %p324_p13 = scmp.ne.s32.totalorder %s50_s15, %s323_s6  ;;  %p328_p0 = scmp.lt.s32.totalorder %s50_s15, %s50_s15 }
  0x3c   :  { %p329_p1 = scmp.lt.s32.totalorder %s327_s7, %s323_s6 }
  0x3e   :  { %p330_p2 = por %p329_p1, %p328_p0 }
  0x40   :  { %p331_p3 = pnand %p330_p2, %p324_p13 }
  0x42   :  { %334 = shalt.err (!%p331_p3)
}
  0x43   :  { %52 = dma.hbm_to_vmem [thread:$0]  %s465_s3, 16, %s50_s15, [#allocation9]  }
  0x44   :  { %357 = dma.done.wait [#allocation3], 128  }
  0x45   :  { %358 = vsyncadd [#allocation3], 4294967168 }
  0x46   :  { %359 = dma.done.wait [#allocation6], 256  }
  0x47   :  { %360 = vsyncadd [#allocation6], 4294967040 }
  0x48   :  { %361 = dma.done.wait [#allocation9], 16  }
  0x49   :  { %362 = vsyncadd [#allocation9], 4294967280  ;;  %v66_v0 = vld [vmem:[#allocation5] sm:$0xff]  ;;  %v65_v1 = vld [vmem:[#allocation2] sm:$0xff]  ;;  %v369_v4 = vmov 0.0   ;;  %vm370_vm0 = vmmov 0   ;;  %v160_v16 = vlaneseq }
  0x4a   :  { %v73_v2 = vmul.f32 %v66_v0, %v66_v0  ;;  %v67_v3 = vmul.f32 %v65_v1, %v65_v1  ;;  %221 = vmatprep.subr.mxu0 %v369_v4  ;;  %223 = vmatprep.mubr.msk.f32.mxu0 %vm370_vm0, %v369_v4  ;;  %v149_v5 = vld [vmem:[#allocation7] sm:$0xff]  ;;  %v371_v6 = vmov 0   ;;  %v217_v15 = vld [vmem:[#allocation8] ss:$0 sm:$0xff]  ;;  %vm372_vm3 = vmmov 1   ;;  %s373_s3 = smov [#allocation10]  }
  0x4b   :  { %235 = vset.pattern.permute.xlu1 %v371_v6  ;;  %236 = vset.pattern.permute.xlu0 %v371_v6  ;;  %v161_v18 = vshrl.u32 %v160_v16, 7  ;;  %v165_v19 = vand.u32 127, %v160_v16  ;;  %vm178_vm7 = vcmask 64512   ;;  %s206_s9 = sshll.u32 %s373_s3, 4  ;;  %vm198_vm10 = vcmask 7168   ;;  %s207_s9 = int_to_ptr.vmem [resolvable:$true] %s206_s9 }
  0x4c   :  { %74 = vadd.xlane.f32.xlu0 %v73_v2  ;;  %152 = vperm.xlu1 %235, %v149_v5   ;;  %s335_s10 = scalar_lea.vmem %s207_s9, 128  ;;  %p340_p5 = scmp.lt.s32.totalorder %s207_s9, %s207_s9 }
  0x4d   :  { %vm167_vm2 = vcmp.ne.s32.totalorder %v161_v18, %v165_v19  ;;  %vm166_vm5 = vcmp.lt.s32.totalorder %v165_v19, 8  ;;  %p336_p4 = scmp.ne.s32.totalorder %s207_s9, %s335_s10  ;;  %p341_p6 = scmp.lt.s32.totalorder %s335_s10, %s335_s10 }
  0x4f   :  { %p342_p7 = por %p341_p6, %p340_p5 }
  0x50   :  { %68 = vadd.xlane.f32.xlu0 %v67_v3 }
  0x51   :  { %p343_p8 = pnand %p342_p7, %p336_p4 }
  0xcb   :  { %v153_v17 = vpop.permute.xlu1 %152 }
  0xcc   :  { %vm158_vm1 = vcmp.eq.s32.totalorder %v153_v17, %v217_v15 }
  0xcd   :  { %vm175_vm4 = vmxor %vm158_vm1, %vm372_vm3 }
  0xce   :  { %vm168_vm6 = vmand %vm158_vm1, %vm167_vm2 }
  0xcf   :  { %vm169_vm8 = vmand %vm168_vm6, %vm166_vm5 }
  0xd0   :  { %v218_v20 = vsel %vm169_vm8, 1.0, %v369_v4  ;;  %vm176_vm9 = vmand %vm175_vm4, %vm166_vm5 }
  0xd1   :  { %v192_v21 = vsel %vm178_vm7, %v218_v20, 0.0 }
  0xd2   :  { %193 = vadd.xlane.f32.xlu0 %v192_v21 }
  0xd9   :  { %v75_v7 = vpop.xlane.xlu0 %74 }
  0xda   :  { %v76_v8 = vmax.f32 %v75_v7, 1e-16 }
  0xdc   :  { %237 = vrsqrt.f32 %v76_v8 }
  0xdd   :  { %v69_v9 = vpop.xlane.xlu0 %68 }
  0xde   :  { %v70_v10 = vmax.f32 %v69_v9, 1e-16 }
  0xe0   :  { %239 = vrsqrt.f32 %v70_v10 }
  0xe6   :  { %v238_v11 = vpop.eup %237 }
  0xe7   :  { %v78_v12 = vmul.f32 %v238_v11, %v66_v0 }
  0xe9   :  { %222 = vmatpush3.xpose.msra.mxu0 %v78_v12 }
  0xea   :  { %v240_v13 = vpop.eup %239 }
  0xeb   :  { %v72_v14 = vmul.f32 %v240_v13, %v65_v1 }
  0xed   :  { %224 = vmatmul.mubr.f32.vlgmr.msra.gmra.mrb[0].mxu0 %v72_v14 }
 0x15f   :  { %v194_v36 = vpop.xlane.xlu0 %193 }
 0x160   :  { %v195_v37 = vmax.f32 %v194_v36, 1.0 }
 0x1c0   :  { %v145_v22 = vpop.f32.mrb[0].mxu0 }
 0x1c1   :  { %v172_v23 = vmul.f32 14.285714, %v145_v22  ;;  %v225_v24 = vpop.f32.mrb[1].mxu0 }
 0x1c3   :  { %v173_v25 = vmul.f32 1.442695, %v172_v23 }
 0x1c5   :  { %241 = vpow2.f32 %v173_v25 }
 0x1cf   :  { %v242_v26 = vpop.eup %241 }
 0x1d0   :  { %v177_v27 = vsel %vm176_vm9, %v242_v26, 0.0 }
 0x1d1   :  { %v179_v28 = vsel %vm178_vm7, %v177_v27, 0.0 }
 0x1d2   :  { %180 = vadd.xlane.f32.xlu1 %v179_v28 }
 0x25f   :  { %v181_v29 = vpop.xlane.xlu1 %180 }
 0x260   :  { %v184_v30 = vadd.f32 %v242_v26, %v181_v29 }
 0x262   :  { %243 = vlog2.f32 %v184_v30 }
 0x263   :  { %245 = vrcp.f32 %v195_v37 }
 0x26c   :  { %v244_v31 = vpop.eup %243 }
 0x26d   :  { %v186_v32 = vmul.f32 0.6931472, %v244_v31  ;;  %v246_v38 = vpop.eup %245 }
 0x26f   :  { %v187_v33 = vsub.f32 %v186_v32, %v172_v23 }
 0x271   :  { %v188_v34 = vmul.f32 %v218_v20, %v187_v33 }
 0x273   :  { %v189_v35 = vsel %vm178_vm7, %v188_v34, 0.0 }
 0x274   :  { %190 = vadd.xlane.f32.xlu0 %v189_v35 }
 0x301   :  { %v191_v39 = vpop.xlane.xlu0 %190 }
 0x302   :  { %v197_v40 = vmul.f32 %v246_v38, %v191_v39 }
 0x304   :  { %199 = vst.msk [vmem:[#allocation10] sm:$0xff] %vm198_vm10, %v197_v40 }
 0x305   :  { %346 = shalt.err (!%p343_p8)
}
 0x306   :  { %s347_s12 = scalar_lea.hbm %s466_s4, 128 }
 0x307   :  { %p348_p9 = scmp.ne.s32.totalorder %s466_s4, %s347_s12  ;;  %p351_p10 = scmp.lt.u32.totalorder %s347_s12, %s466_s4 }
 0x309   :  { %p353_p11 = pnand %p351_p10, %p348_p9 }
 0x30b   :  { %356 = shalt.err (!%p353_p11)
}
 0x30c   :  { %209 = dma.vmem_to_hbm [thread:$0]  %s207_s9, 128, %s466_s4, [#allocation4]  }
 0x30d   :  { %363 = dma.done.wait [#allocation4], 128  }
 0x30e   :  { %364 = vsyncadd [#allocation4], 4294967168 }
 0x30f   :  { %213 = vsyncpa [#allocation3], 1 }
 0x310   :  { %214 = vsyncpa [#allocation6], 1 }
 0x311   :  { %215 = vsyncpa [#allocation9], 1 }
 0x312   :  { %216 = vsyncpa [#allocation4], 1 }

</bundles_post_ra>
